<compile_context>
chip_gen: v7x
topology: tpu7x:2x2x1
jax: 0.10.0
libtpu: 0.0.40
codegen_flags: <defaults>
</compile_context>

<pallas_src>
import jax
import jax.numpy as jnp
from jax.experimental import pallas as pl
from jax.experimental.pallas import tpu as pltpu


def _round_up(x: int, m: int) -> int:
    return ((x + m - 1) // m) * m


def _vmem_capacity_bytes() -> int:
    """Per-core VMEM capacity; conservative 64 MiB (v7x) fallback."""
    try:
        info = pltpu.get_tpu_info()
        cap = getattr(info, "vmem_capacity_bytes", None)
        if cap:
            return int(cap)
    except Exception:
        pass
    return 64 * 2**20


def _vmem_limit(wset_bytes: int, cap_bytes: int) -> int:
    """~1.5x the double-buffered working set, floored at 8 MiB, <= 0.8*cap."""
    lim = max(int(1.5 * wset_bytes), 8 * 2**20)
    lim = min(lim, int(0.8 * cap_bytes))
    return int(max(lim, wset_bytes))


# --------------------------------------------------------------------------
# Kernels
# --------------------------------------------------------------------------
def _inv_norm_kernel(counts_ref, idf_ref, inv_ref):
    # counts_ref: (TM, TV1) narrow-dtype term counts for a (doc, vocab) tile
    # idf_ref:    (1, TV1)  float32 IDF weights for this vocab tile (0-padded)
    # inv_ref:    (TM, 1)   float32; running sumsq over j, finalized to
    #                       rsqrt(sumsq) (zero-row guarded) on the last tile.
    j = pl.program_id(1)

    @pl.when(j == 0)
    def _():
        inv_ref[...] = jnp.zeros_like(inv_ref)

    w = counts_ref[...].astype(jnp.float32) * idf_ref[...]
    inv_ref[...] += jnp.sum(w * w, axis=-1, keepdims=True)

    @pl.when(j == pl.num_programs(1) - 1)
    def _():
        sq = inv_ref[...]
        inv_ref[...] = jnp.where(sq > 0.0, jax.lax.rsqrt(sq), 0.0)


def _scale_kernel(counts_ref, idf_ref, inv_ref, out_ref):
    # counts_ref: (TM, TV2) narrow-dtype term counts
    # idf_ref:    (1, TV2)  float32 IDF weights (0-padded)
    # inv_ref:    (TM, 1)   float32 finalized 1/||row||_2 (0 for empty rows)
    # out_ref:    (TM, TV2) L2-normalized TF-IDF tile
    w = counts_ref[...].astype(jnp.float32) * idf_ref[...]
    out_ref[...] = (w * inv_ref[...]).astype(out_ref.dtype)


def _fused_kernel(counts_ref, idf_ref, out_ref):
    # Single pass when a full-vocab row tile fits VMEM: no second counts read.
    # counts_ref: (TM, V), idf_ref: (1, V), out_ref: (TM, V)
    w = counts_ref[...].astype(jnp.float32) * idf_ref[...]
    sq = jnp.sum(w * w, axis=-1, keepdims=True)
    inv = jnp.where(sq > 0.0, jax.lax.rsqrt(sq), 0.0)
    out_ref[...] = (w * inv).astype(out_ref.dtype)


# --------------------------------------------------------------------------
# Wrapper
# --------------------------------------------------------------------------
def tfidf_transform(counts: jax.Array, idf: jax.Array, *,
                    tm: int = 512, tv: int | None = None,
                    tv_sumsq: int | None = None,
                    out_dtype=jnp.float32,
                    fuse: bool | None = None) -> jax.Array:
    """Dense equivalent of TfidfVectorizer.transform(docs).toarray().

    counts: (N, V) per-document term counts (any integer dtype; narrow dtypes
            such as int8/int16 keep the HBM read traffic minimal).
    idf:    (V,)   IDF weights.
    Returns (N, V) `out_dtype`, L2-normalized per row (empty rows stay zero).
    """
    n, v = counts.shape
    assert idf.shape[-1] == v
    c_bytes = jnp.dtype(counts.dtype).itemsize
    o_bytes = jnp.dtype(out_dtype).itemsize
    vmem_cap = _vmem_capacity_bytes()

    # Sublane alignment for the counts dtype (int8 packs 4 rows / 32-bit
    # sublane word, int16 packs 2, 32-bit packs 1).
    sub = max(8, (8 * 4) // max(c_bytes, 1))

    # Doc tile: clamp to the problem, multiple of `sub`, and keep >= 2 doc
    # blocks where possible so the "parallel" doc axis splits across v7x's
    # two TensorCores.
    tm_eff = _round_up(min(tm, _round_up(max(n, 1), sub)), sub)
    tm_eff = max(sub, min(tm_eff, _round_up(max(pl.cdiv(n, 2), 1), sub)))
    nd = pl.cdiv(n, tm_eff)

    idf_f32 = idf.reshape(1, v).astype(jnp.float32)

    # ---- fused single-pass path (full-vocab row tiles fit VMEM) -----------
    fused_budget = int(0.45 * vmem_cap)
    per_row_bytes = v * (c_bytes + o_bytes)
    tm_fused_max = (fused_budget - 8 * v) // max(2 * per_row_bytes, 1)
    tm_fused_max = (tm_fused_max // sub) * sub
    can_fuse = tm_fused_max >= sub
    if fuse is None:
        fuse = can_fuse
    if fuse and not can_fuse:
        raise ValueError("fused path requested but a full-vocab row tile "
                         "does not fit in VMEM; use fuse=False")

    if fuse:
        tm_f = max(sub, min(tm_eff, tm_fused_max))
        nd_f = pl.cdiv(n, tm_f)
        wset = 2 * (tm_f * v * (c_bytes + o_bytes) + v * 4)
        return pl.pallas_call(
            _fused_kernel,
            out_shape=jax.ShapeDtypeStruct((n, v), out_dtype),
            grid_spec=pltpu.PrefetchScalarGridSpec(
                num_scalar_prefetch=0,
                grid=(nd_f,),
                in_specs=[
                    pl.BlockSpec((tm_f, v), lambda i: (i, 0)),
                    pl.BlockSpec((1, v), lambda i: (0, 0)),
                ],
                out_specs=pl.BlockSpec((tm_f, v), lambda i: (i, 0)),
            ),
            compiler_params=pltpu.CompilerParams(
                dimension_semantics=("parallel",),
                vmem_limit_bytes=_vmem_limit(wset, vmem_cap),
            ),
        )(counts, idf_f32)

    # ---- two-pass path ------------------------------------------------------
    # Pass-2 vocab tile (write-heavy pass): generation-dependent default.
    if tv is None:
        tv = 4096 if vmem_cap >= 100 * 2**20 else 2048
    budget2 = int(0.45 * vmem_cap)
    per_col2 = tm_eff * (c_bytes + o_bytes) + 4
    tv2_max = max(128, (budget2 // max(2 * per_col2, 1) // 128) * 128)
    tv2 = _round_up(min(tv, _round_up(v, 128)), 128)
    tv2 = max(128, min(tv2, tv2_max))
    nv2 = pl.cdiv(v, tv2)

    # Pass-1 vocab tile: no f32 output tile to hold, so it can be much wider.
    if tv_sumsq is None:
        tv_sumsq = 16384
    budget1 = int(0.35 * vmem_cap)
    per_col1 = tm_eff * c_bytes + 4
    tv1_max = max(128, (budget1 // max(2 * per_col1, 1) // 128) * 128)
    tv1 = _round_up(min(tv_sumsq, _round_up(v, 128)), 128)
    tv1 = max(128, min(tv1, tv1_max))
    nv1 = pl.cdiv(v, tv1)

    # Zero-pad ONLY the (1, V) IDF row so ragged last-vocab-tile reads of
    # `counts` (finite integer garbage) multiply by 0.0; counts and the output
    # are never padded or sliced.  Padded doc rows are masked on write.
    v_pad = max(nv1 * tv1, nv2 * tv2)
    idf_p = idf_f32
    if v_pad != v:
        idf_p = jnp.pad(idf_f32, ((0, 0), (0, v_pad - v)))

    # --- pass 1: per-row inverse L2 norm of w = counts * idf ----------------
    wset1 = 2 * (tm_eff * tv1 * c_bytes + tv1 * 4 + tm_eff * 4)
    inv = pl.pallas_call(
        _inv_norm_kernel,
        out_shape=jax.ShapeDtypeStruct((n, 1), jnp.float32),
        grid_spec=pltpu.PrefetchScalarGridSpec(
            num_scalar_prefetch=0,
            grid=(nd, nv1),                                # vocab reduction last
            in_specs=[
                pl.BlockSpec((tm_eff, tv1), lambda i, j: (i, j)),
                pl.BlockSpec((1, tv1), lambda i, j: (0, j)),
            ],
            out_specs=pl.BlockSpec((tm_eff, 1), lambda i, j: (i, 0)),
        ),
        compiler_params=pltpu.CompilerParams(
            dimension_semantics=("parallel", "arbitrary"),
            vmem_limit_bytes=_vmem_limit(wset1, vmem_cap),
        ),
    )(counts, idf_p)

    # --- pass 2: out = (counts * idf) * inv ---------------------------------
    wset2 = 2 * (tm_eff * tv2 * (c_bytes + o_bytes) + tv2 * 4 + tm_eff * 4)
    out = pl.pallas_call(
        _scale_kernel,
        out_shape=jax.ShapeDtypeStruct((n, v), out_dtype),
        grid_spec=pltpu.PrefetchScalarGridSpec(
            num_scalar_prefetch=0,
            grid=(nd, nv2),
            in_specs=[
                pl.BlockSpec((tm_eff, tv2), lambda i, j: (i, j)),
                pl.BlockSpec((1, tv2), lambda i, j: (0, j)),
                pl.BlockSpec((tm_eff, 1), lambda i, j: (i, 0)),
            ],
            out_specs=pl.BlockSpec((tm_eff, tv2), lambda i, j: (i, j)),
        ),
        compiler_params=pltpu.CompilerParams(
            dimension_semantics=("parallel", "parallel"),
            vmem_limit_bytes=_vmem_limit(wset2, vmem_cap),
        ),
    )(counts, idf_p, inv)
    return out


def reference_tfidf(counts: jax.Array, idf: jax.Array) -> jax.Array:
    w = counts.astype(jnp.float32) * idf.reshape(1, -1).astype(jnp.float32)
    norm = jnp.sqrt(jnp.sum(w * w, axis=-1, keepdims=True))
    return jnp.where(norm > 0.0, w / norm, 0.0)


if __name__ == "__main__":
    key = jax.random.PRNGKey(0)

    # ---- test 1: small int8 counts, auto path (fused single-pass) ----------
    n_docs, vocab = 12, 200
    k1, k2, k3, k4 = jax.random.split(key, 4)
    raw = jax.random.randint(k1, (n_docs, vocab), minval=0, maxval=6)
    mask = jax.random.bernoulli(k2, p=0.3, shape=(n_docs, vocab))
    counts = (raw * mask).astype(jnp.int8)
    counts = counts.at[3].set(0)  # empty document: exercises the zero-norm guard

    df = jnp.sum((counts > 0).astype(jnp.float32), axis=0)
    idf = jnp.log((1.0 + n_docs) / (1.0 + df)) + 1.0

    out = jax.block_until_ready(tfidf_transform(counts, idf))
    ref = reference_tfidf(counts, idf)
    assert out.shape == (n_docs, vocab)
    assert out.dtype == jnp.float32
    assert jnp.allclose(out, ref, atol=1e-5, rtol=1e-5)

    # ---- test 2: int16 counts (>127 ok), forced two-pass, ragged tiles -----
    n2, v2 = 70, 700
    raw2 = jax.random.randint(k3, (n2, v2), minval=0, maxval=300)
    mask2 = jax.random.bernoulli(k4, p=0.25, shape=(n2, v2))
    counts2 = (raw2 * mask2).astype(jnp.int16)
    counts2 = counts2.at[5].set(0)

    df2 = jnp.sum((counts2 > 0).astype(jnp.float32), axis=0)
    idf2 = jnp.log((1.0 + n2) / (1.0 + df2)) + 1.0

    out2 = jax.block_until_ready(
        tfidf_transform(counts2, idf2, tm=32, tv=128, tv_sumsq=128, fuse=False))
    ref2 = reference_tfidf(counts2, idf2)
    assert out2.shape == (n2, v2)
    assert out2.dtype == jnp.float32
    assert jnp.allclose(out2, ref2, atol=1e-5, rtol=1e-5)

    print("KERNEL_OK")
</pallas_src>

<mosaic_0001>
module attributes {stable_mosaic.version = 11 : i64} {
  func.func @_fused_kernel(%arg0: i32, %arg1: memref<32x200xi8, #tpu.memory_space<vmem>>, %arg2: memref<1x200xf32, #tpu.memory_space<vmem>>, %arg3: memref<32x200xf32, #tpu.memory_space<vmem>>) attributes {dimension_semantics = [#tpu.dimension_semantics<parallel>], iteration_bounds = array<i64: 1>, scalar_prefetch = 0 : i64, scratch_operands = 0 : i64, tpu.core_type = #tpu.core_type<tc>, window_params = [{transform_indices = @transform_0, window_bounds = array<i64: 32, 200>}, {pipeline_mode = #tpu.pipeline_mode<synchronous>, transform_indices = @transform_1, window_bounds = array<i64: 1, 200>}, {transform_indices = @transform_2, window_bounds = array<i64: 32, 200>}]} {
    %c0 = arith.constant 0 : index
    %c0_0 = arith.constant 0 : index
    %0 = vector.load %arg1[%c0, %c0_0] : memref<32x200xi8, #tpu.memory_space<vmem>>, vector<32x200xi8>
    %1 = arith.sitofp %0 : vector<32x200xi8> to vector<32x200xf32>
    %c0_1 = arith.constant 0 : index
    %c0_2 = arith.constant 0 : index
    %2 = vector.load %arg2[%c0_1, %c0_2] : memref<1x200xf32, #tpu.memory_space<vmem>>, vector<1x200xf32>
    %3 = vector.broadcast %2 : vector<1x200xf32> to vector<32x200xf32>
    %4 = arith.mulf %1, %3 : vector<32x200xf32>
    %5 = arith.mulf %4, %4 : vector<32x200xf32>
    %cst = arith.constant dense<0.000000e+00> : vector<32xf32>
    %6 = vector.multi_reduction <add>, %5, %cst [1] : vector<32x200xf32> to vector<32xf32>
    %7 = vector.shape_cast %6 : vector<32xf32> to vector<32x1xf32>
    %cst_3 = arith.constant 0.000000e+00 : f32
    %8 = vector.broadcast %cst_3 : f32 to vector<32x1xf32>
    %9 = arith.cmpf ogt, %7, %8 : vector<32x1xf32>
    %10 = math.rsqrt %7 : vector<32x1xf32>
    %cst_4 = arith.constant 0.000000e+00 : f32
    %11 = vector.broadcast %cst_4 : f32 to vector<32x1xf32>
    %12 = arith.select %9, %10, %11 : vector<32x1xi1>, vector<32x1xf32>
    %13 = vector.broadcast %12 : vector<32x1xf32> to vector<32x200xf32>
    %14 = arith.mulf %4, %13 : vector<32x200xf32>
    %c0_5 = arith.constant 0 : index
    %c0_6 = arith.constant 0 : index
    %15 = vector.load %arg3[%c0_5, %c0_6] : memref<32x200xf32, #tpu.memory_space<vmem>>, vector<32x200xf32>
    tpu.vector_store %arg3[%c0_5, %c0_6], %14 {strides = array<i32>} : memref<32x200xf32, #tpu.memory_space<vmem>>, vector<32x200xf32>,
    return
  }
  func.func @transform_0(%arg0: i32) -> (i32, i32) {
    %c0_i32 = arith.constant 0 : i32
    %c0_i32_0 = arith.constant 0 : i32
    return %arg0, %c0_i32 : i32, i32
  }
  func.func @transform_1(%arg0: i32) -> (i32, i32) {
    %c0_i32 = arith.constant 0 : i32
    %c0_i32_0 = arith.constant 0 : i32
    %c0_i32_1 = arith.constant 0 : i32
    return %c0_i32, %c0_i32_0 : i32, i32
  }
  func.func @transform_2(%arg0: i32) -> (i32, i32) {
    %c0_i32 = arith.constant 0 : i32
    %c0_i32_0 = arith.constant 0 : i32
    return %arg0, %c0_i32 : i32, i32
  }
}

</mosaic_0001>

<bundles_post_ra>
// kernel: tpu_custom_call.1
= control target key start
LH: loop header
LB: loop body
LE: loop exit
PB: predicated region body
PF: predicated region fallthrough
CT: control target
= control target key end

     0   :  { %7 = vsyncpa [#allocation3], 0  ;;  %s267_s0 = inlined_call_operand.hbm [shape: s8[12,200], index: 0, kind: input, shape index: {}]   ;;  %s268_s1 = inlined_call_operand.vmem [shape: f32[1,200], index: 1, kind: input, shape index: {}]   ;;  %s269_s2 = inlined_call_operand.hbm [shape: f32[12,200], index: 2, kind: output, shape index: {}]  }
   0x1   :  { %8 = vsyncpa [#allocation4], 0 }
   0x2   :  { %13 = vsyncadd [#allocation3], 128  ;;  %s211_s9 = smov [#allocation2]   ;;  %s163_s13 = scalar_lea.hbm %s267_s0, 128 }
   0x3   :  { %s14_s10 = sshll.u32 %s211_s9, 4  ;;  %p164_p0 = scmp.ne.s32.totalorder %s267_s0, %s163_s13  ;;  %s15_s10 = int_to_ptr.vmem [resolvable:$true] %s14_s10 }
   0x4   :  { %p167_p1 = scmp.lt.u32.totalorder %s163_s13, %s267_s0 }
   0x6   :  { %p169_p2 = pnand %p167_p1, %p164_p0 }
   0x8   :  { %172 = shalt.err (!%p169_p2)
}
   0x9   :  { %s173_s18 = scalar_lea.vmem %s15_s10, 128  ;;  %s177_s19 = scalar_lea.vmem %s15_s10, 256 }
   0xa   :  { %p174_p3 = scmp.ne.s32.totalorder %s15_s10, %s173_s18  ;;  %p178_p4 = scmp.lt.s32.totalorder %s15_s10, %s15_s10 }
   0xb   :  { %p179_p5 = scmp.lt.s32.totalorder %s177_s19, %s173_s18 }
   0xd   :  { %p180_p6 = por %p179_p5, %p178_p4 }
   0xf   :  { %p181_p7 = pnand %p180_p6, %p174_p3 }
  0x11   :  { %184 = shalt.err (!%p181_p7)
}
  0x12   :  { %s212_s20 = smov 64   ;;  %s213_s21 = smov 4  }
  0x13   :  { %20 = dma.hbm_to_vmem [thread:$0]  %s267_s0, 128, %s15_s10, [#allocation3], %s212_s20, %s212_s20, %s213_s21  }
  0x14   :  { %207 = dma.done.wait [#allocation3], 256  }
  0x15   :  { %208 = vsyncadd [#allocation3], 4294967040  ;;  %v48_v0 = vlaneseq  ;;  %v148_v4 = vld [vmem:[#allocation2 + $0x8] sm:$0xff]   ;;  %v46_v5 = vld [vmem:[%s268_s1] sm:$0x3]  ;;  %vm74_vm0 = vcmask 588800  }
  0x16   :  { %v137_v6 = vld [vmem:[#allocation2] sm:$0xff]   ;;  %v144_v7 = vunpack.c.0.s8 %v148_v4  ;;  %v145_v8 = vunpack.c.1.s8 %v148_v4  ;;  %v146_v13 = vunpack.c.2.s8 %v148_v4  ;;  %v147_v14 = vunpack.c.3.s8 %v148_v4 }
  0x17   :  { %v49_v1 = vshrl.u32 %v48_v0, 7  ;;  %v138_v11 = vunpack.c.0.s8 %v137_v6  ;;  %v139_v12 = vunpack.c.1.s8 %v137_v6  ;;  %v140_v17 = vunpack.c.2.s8 %v137_v6 }
  0x18   :  { %v42_v15 = vcvt.s32.f32 %v144_v7  ;;  %v43_v16 = vcvt.s32.f32 %v145_v8  ;;  %v141_v18 = vunpack.c.3.s8 %v137_v6  ;;  %v44_v21 = vcvt.s32.f32 %v146_v13 }
  0x19   :  { %v50_v2 = vsub.s32 0, %v49_v1  ;;  %v54_v3 = vsub.s32 1, %v49_v1  ;;  %v38_v19 = vcvt.s32.f32 %v138_v11  ;;  %v39_v20 = vcvt.s32.f32 %v139_v12 }
  0x1a   :  { %v45_v22 = vcvt.s32.f32 %v147_v14  ;;  %v40_v25 = vcvt.s32.f32 %v140_v17  ;;  %v41_v26 = vcvt.s32.f32 %v141_v18 }
  0x1b   :  { %v51_v9 = vrot.slane %v46_v5, %v50_v2  ;;  %v55_v10 = vrot.slane %v46_v5, %v54_v3 }
  0x1d   :  { %v62_v23 = vmul.f32 %v51_v9, %v42_v15  ;;  %v63_v24 = vmul.f32 %v55_v10, %v43_v16  ;;  %v58_v27 = vmul.f32 %v51_v9, %v38_v19  ;;  %v59_v28 = vmul.f32 %v55_v10, %v39_v20 }
  0x1e   :  { %v64_v29 = vmul.f32 %v51_v9, %v44_v21  ;;  %v65_v30 = vmul.f32 %v55_v10, %v45_v22  ;;  %v60_v33 = vmul.f32 %v51_v9, %v40_v25  ;;  %v61_v34 = vmul.f32 %v55_v10, %v41_v26 }
  0x1f   :  { %v70_v31 = vmul.f32 %v62_v23, %v62_v23  ;;  %v71_v32 = vmul.f32 %v63_v24, %v63_v24  ;;  %v66_v35 = vmul.f32 %v58_v27, %v58_v27  ;;  %v67_v36 = vmul.f32 %v59_v28, %v59_v28 }
  0x20   :  { %v72_v37 = vmul.f32 %v64_v29, %v64_v29  ;;  %v73_v38 = vmul.f32 %v65_v30, %v65_v30  ;;  %v68_v40 = vmul.f32 %v60_v33, %v60_v33  ;;  %v69_v41 = vmul.f32 %v61_v34, %v61_v34 }
  0x21   :  { %v83_v39 = vsel %vm74_vm0, %v71_v32, 0.0  ;;  %v75_v43 = vsel %vm74_vm0, %v67_v36, 0.0 }
  0x22   :  { %v84_v42 = vadd.f32 %v83_v39, %v70_v31  ;;  %v87_v44 = vsel %vm74_vm0, %v73_v38, 0.0  ;;  %v76_v45 = vadd.f32 %v75_v43, %v66_v35  ;;  %v79_v46 = vsel %vm74_vm0, %v69_v41, 0.0 }
  0x23   :  { %v88_v47 = vadd.f32 %v87_v44, %v72_v37  ;;  %v80_v48 = vadd.f32 %v79_v46, %v68_v40 }
  0x24   :  { %85 = vadd.xlane.f32.xlu1 %v84_v42  ;;  %77 = vadd.xlane.f32.xlu0 %v76_v45 }
  0x28   :  { %89 = vadd.xlane.f32.xlu1 %v88_v47  ;;  %81 = vadd.xlane.f32.xlu0 %v80_v48 }
  0xb1   :  { %v86_v49 = vpop.xlane.xlu1 %85  ;;  %v78_v50 = vpop.xlane.xlu0 %77 }
  0xb2   :  { %155 = vrsqrt.f32 %v86_v49  ;;  %vm93_vm1 = vcmp.gt.f32.partialorder %v86_v49, 0.0  ;;  %vm91_vm2 = vcmp.gt.f32.partialorder %v78_v50, 0.0 }
  0xb3   :  { %157 = vrsqrt.f32 %v78_v50 }
  0xb5   :  { %v90_v51 = vpop.xlane.xlu1 %89  ;;  %v82_v52 = vpop.xlane.xlu0 %81 }
  0xb6   :  { %159 = vrsqrt.f32 %v90_v51  ;;  %vm94_vm3 = vcmp.gt.f32.partialorder %v90_v51, 0.0  ;;  %vm92_vm4 = vcmp.gt.f32.partialorder %v82_v52, 0.0 }
  0xb7   :  { %161 = vrsqrt.f32 %v82_v52 }
  0xbc   :  { %v156_v53 = vpop.eup %155 }
  0xbd   :  { %v158_v54 = vpop.eup %157  ;;  %v101_v55 = vsel %vm93_vm1, %v156_v53, 0.0 }
  0xbe   :  { %v107_v56 = vmul.f32 %v101_v55, %v62_v23  ;;  %v108_v57 = vmul.f32 %v101_v55, %v63_v24  ;;  %v99_v58 = vsel %vm91_vm2, %v158_v54, 0.0 }
  0xbf   :  { %v103_v59 = vmul.f32 %v99_v58, %v58_v27  ;;  %v104_v60 = vmul.f32 %v99_v58, %v59_v28 }
  0xc0   :  { %v160_v61 = vpop.eup %159  ;;  %115 = vst [vmem:[#allocation5 + $0x20] sm:$0xff] %v107_v56  ;;  %116 = vst.msk [vmem:[#allocation5 + $0x28] sm:$0xff] %vm74_vm0, %v108_v57 }
  0xc1   :  { %v162_v62 = vpop.eup %161  ;;  %111 = vst [vmem:[#allocation5] sm:$0xff] %v103_v59  ;;  %112 = vst.msk [vmem:[#allocation5 + $0x8] sm:$0xff] %vm74_vm0, %v104_v60  ;;  %v102_v63 = vsel %vm94_vm3, %v160_v61, 0.0 }
  0xc2   :  { %v109_v0 = vmul.f32 %v102_v63, %v64_v29  ;;  %v110_v1 = vmul.f32 %v102_v63, %v65_v30  ;;  %v100_v2 = vsel %vm92_vm4, %v162_v62, 0.0 }
  0xc3   :  { %v105_v3 = vmul.f32 %v100_v2, %v60_v33  ;;  %v106_v4 = vmul.f32 %v100_v2, %v61_v34 }
  0xc4   :  { %117 = vst [vmem:[#allocation5 + $0x30] sm:$0xff] %v109_v0  ;;  %118 = vst.msk [vmem:[#allocation5 + $0x38] sm:$0xff] %vm74_vm0, %v110_v1 }
  0xc5   :  { %113 = vst [vmem:[#allocation5 + $0x10] sm:$0xff] %v105_v3  ;;  %114 = vst.msk [vmem:[#allocation5 + $0x18] sm:$0xff] %vm74_vm0, %v106_v4 }
  0xc6   :  { %123 = vsyncadd [#allocation4], 512  ;;  %s214_s0 = smov [#allocation5]  }
  0xc7   :  { %s124_s1 = sshll.u32 %s214_s0, 4  ;;  %s125_s1 = int_to_ptr.vmem [resolvable:$true] %s124_s1 }
  0xc8   :  { %s185_s26 = scalar_lea.vmem %s125_s1, 512  ;;  %s189_s27 = scalar_lea.vmem %s125_s1, 1024 }
  0xc9   :  { %p186_p8 = scmp.ne.s32.totalorder %s125_s1, %s185_s26  ;;  %p190_p9 = scmp.lt.s32.totalorder %s125_s1, %s125_s1 }
  0xca   :  { %p191_p10 = scmp.lt.s32.totalorder %s189_s27, %s185_s26 }
  0xcc   :  { %p192_p11 = por %p191_p10, %p190_p9 }
  0xce   :  { %p193_p12 = pnand %p192_p11, %p186_p8 }
  0xd0   :  { %196 = shalt.err (!%p193_p12)
}
  0xd1   :  { %s197_s30 = scalar_lea.hbm %s269_s2, 512 }
  0xd2   :  { %p198_p13 = scmp.ne.s32.totalorder %s269_s2, %s197_s30  ;;  %p201_p0 = scmp.lt.u32.totalorder %s197_s30, %s269_s2 }
  0xd4   :  { %p203_p1 = pnand %p201_p0, %p198_p13 }
  0xd6   :  { %206 = shalt.err (!%p203_p1)
}
  0xd7   :  { %s215_s7 = smov 256   ;;  %s216_s8 = smov 16  }
  0xd8   :  { %130 = dma.vmem_to_hbm [thread:$0]  %s125_s1, 512, %s269_s2, [#allocation4], %s215_s7, %s215_s7, %s216_s8  }
  0xd9   :  { %209 = dma.done.wait [#allocation4], 1024  }
  0xda   :  { %210 = vsyncadd [#allocation4], 4294966272 }
  0xdb   :  { %134 = vsyncpa [#allocation3], 1 }
  0xdc   :  { %135 = vsyncpa [#allocation4], 1 }

</bundles_post_ra>
